<compile_context>
chip_gen: v7x
topology: tpu7x:2x2x1
jax: 0.10.0
libtpu: 0.0.40
codegen_flags: <defaults>
</compile_context>

<pallas_src>
import math

import jax
import jax.numpy as jnp
from jax import lax
from jax.experimental import pallas as pl
from jax.experimental.pallas import tpu as pltpu

_LANE = 128
_SUB = 8                    # f32 sublane tile
_DEFAULT_TILE_ROWS = 2048   # 2048 x 128 f32 = 1 MiB per input block


def _make_reduce_kernel(ops, tile_rows, tiles_per_split, rows_valid, need_mask):
    """Builds a kernel accumulating sum(op(x - y)) for each op in `ops`.

    Each output ref is an (8, 128) f32 block resident across the inner
    (reduction) grid axis; partial sums stay lane/sublane-parallel and the
    final collapse to a scalar happens outside the kernel.
    """
    folds = tile_rows // _SUB

    def kernel(x_ref, y_ref, *out_refs):
        i = pl.program_id(1)

        @pl.when(i == 0)
        def _():
            for o_ref in out_refs:
                o_ref[...] = jnp.zeros_like(o_ref)

        d = x_ref[...].astype(jnp.float32) - y_ref[...].astype(jnp.float32)

        if need_mask:
            c = pl.program_id(0)
            row_start = (c * tiles_per_split + i) * tile_rows
            row_ids = row_start + lax.broadcasted_iota(
                jnp.int32, (tile_rows, _LANE), 0)
            d = jnp.where(row_ids < rows_valid, d, 0.0)

        for o_ref, op in zip(out_refs, ops):
            if op == "sq":
                v = d * d
            elif op == "abs":
                v = jnp.abs(d)
            else:
                raise ValueError(f"unknown reduction op: {op}")
            # Fold whole (8,128) vregs together: pure VALU adds, no lane reduce.
            o_ref[...] += jnp.sum(v.reshape(folds, _SUB, _LANE), axis=0)

    return kernel


def _as_slab(x):
    """Ravel to a lane-dense (rows, 128) slab in the NATIVE dtype.

    No copy when the element count is already a multiple of 8*128 (the common
    case for NCHW activations); otherwise a small zero pad is appended (zeros
    contribute 0 to both reductions).
    """
    n = math.prod(x.shape)
    flat = jnp.ravel(x)
    chunk = _SUB * _LANE
    n_pad = (-n) % chunk
    if n_pad:
        flat = jnp.pad(flat, (0, n_pad))
    rows = (n + n_pad) // _LANE
    return flat.reshape(rows, _LANE), n


def _pallas_diff_sums(pred, target, ops=("sq", "abs")):
    """Single streaming pass over (pred, target); returns one f32 scalar per op."""
    assert pred.shape == target.shape, (pred.shape, target.shape)
    x2d, _ = _as_slab(pred)
    y2d, _ = _as_slab(target)
    rows = x2d.shape[0]

    tile_rows = min(_DEFAULT_TILE_ROWS, rows)
    total_tiles = -(-rows // tile_rows)
    num_splits = 2 if total_tiles >= 2 else 1          # 2 TCs on v7x; harmless on 1-TC chips
    tiles_per_split = -(-total_tiles // num_splits)
    need_mask = (rows % tile_rows != 0) or (tiles_per_split * num_splits != total_tiles)

    def in_map(c, i):
        # Clamp so the index_map never addresses a block past the array; masked
        # (nominal row >= rows) contributions are zeroed in-kernel.
        return (jnp.minimum(c * tiles_per_split + i, total_tiles - 1), 0)

    out_map = lambda c, i: (c, 0)

    kernel = _make_reduce_kernel(ops, tile_rows, tiles_per_split, rows, need_mask)

    out_shape = tuple(
        jax.ShapeDtypeStruct((num_splits * _SUB, _LANE), jnp.float32) for _ in ops
    )
    out_specs = [pl.BlockSpec((_SUB, _LANE), out_map) for _ in ops]

    n_elems = rows * _LANE
    bytes_accessed = (
        2 * n_elems * x2d.dtype.itemsize
        + len(ops) * num_splits * _SUB * _LANE * 4
    )
    flops = (1 + 2 * len(ops)) * n_elems  # sub + per-op (mul/abs + accumulate)
    cost = pl.CostEstimate(flops=flops, transcendentals=0,
                           bytes_accessed=bytes_accessed)

    outs = pl.pallas_call(
        kernel,
        out_shape=out_shape,
        grid_spec=pltpu.PrefetchScalarGridSpec(
            num_scalar_prefetch=0,
            grid=(num_splits, tiles_per_split),
            in_specs=[
                pl.BlockSpec((tile_rows, _LANE), in_map),
                pl.BlockSpec((tile_rows, _LANE), in_map),
            ],
            out_specs=out_specs,
        ),
        compiler_params=pltpu.CompilerParams(
            dimension_semantics=("parallel", "arbitrary"),
        ),
        cost_estimate=cost,
    )(x2d, y2d)

    if not isinstance(outs, (list, tuple)):
        outs = (outs,)
    # Tiny final collapse of per-split / per-lane partials (<= 2*8*128 values).
    return tuple(jnp.sum(o) for o in outs)


def mse_loss(pred, target):
    """nn.MSELoss(reduction='mean') equivalent."""
    n = math.prod(pred.shape)
    (sq,) = _pallas_diff_sums(pred, target, ops=("sq",))
    return sq / jnp.float32(n)


def l1_loss(pred, target):
    """nn.L1Loss(reduction='mean') equivalent."""
    n = math.prod(pred.shape)
    (ab,) = _pallas_diff_sums(pred, target, ops=("abs",))
    return ab / jnp.float32(n)


def mse_and_l1(pred, target):
    """Fused variant: both reductions in a single HBM pass over one tensor pair."""
    n = math.prod(pred.shape)
    sq, ab = _pallas_diff_sums(pred, target, ops=("sq", "abs"))
    return sq / jnp.float32(n), ab / jnp.float32(n)


class MultiLoss:
    """JAX/Pallas port of MultiLoss: dict of criteria -> dict of losses."""

    def __init__(self, criteria: dict):
        self.criterion_dict = {}
        self.losses_dict = {}
        self.num_criteria = 0
        self.total_loss = jnp.float32(0.0)
        for n, l in criteria.items():
            self.add_criterion(l, n)

    def add_criterion(self, criterion, criterion_name=None):
        criterion_name = (
            "l_%s" % self.num_criteria if criterion_name is None else criterion_name
        )
        self.criterion_dict[criterion_name] = criterion
        self.num_criteria += 1

    def forward(self, inputs: dict, targets: dict):
        # Mirrors the abstract forward: one loss per registered criterion;
        # total_loss is the sum (what backward()/item()/tensor() operate on).
        self.losses_dict = {}
        for k in self.criterion_dict.keys():
            self.losses_dict[k] = self.criterion_dict[k](inputs[k], targets[k])
        self.total_loss = sum(self.losses_dict.values())
        return self.losses_dict

    def item(self):
        # Note: only valid on concrete (non-traced) values, like Tensor.item().
        return float(self.total_loss)

    def tensor(self):
        return self.total_loss

    def extra_forward(self, inputs, targets, suffix="", weight=1.0):
        losses_dict = {}
        for k in self.criterion_dict.keys():
            losses_dict[k] = weight * self.criterion_dict[k](inputs[k], targets[k])
        self.add_extra_losses(losses_dict, suffix)

    def add_extra_loss(self, loss, loss_name: str):
        self.losses_dict[loss_name] = loss

    def add_extra_losses(self, losses_dict, suffix=""):
        for k, v in losses_dict.items():
            self.add_extra_loss(v, k if not suffix else f"{k}_{suffix}")

    # TODO(synk): backward() (autograd on total_loss) is a framework concern,
    # not a kernel; use jax.grad on a functional wrapper if gradients are needed.


if __name__ == "__main__":
    key = jax.random.PRNGKey(0)
    k1, k2, k3, k4 = jax.random.split(key, 4)

    # Small NCHW-shaped predictions / targets, one pair per criterion.
    x_mse = jax.random.normal(k1, (2, 4, 16, 16), jnp.float32)
    y_mse = jax.random.normal(k2, (2, 4, 16, 16), jnp.float32)
    x_l1 = jax.random.normal(k3, (2, 4, 16, 16), jnp.float32)
    y_l1 = jax.random.normal(k4, (2, 4, 16, 16), jnp.float32)

    multi = MultiLoss({"mse": mse_loss, "l1": l1_loss})
    losses = multi.forward(
        inputs={"mse": x_mse, "l1": x_l1},
        targets={"mse": y_mse, "l1": y_l1},
    )
    total = jax.block_until_ready(multi.tensor())

    # Pure-JAX reference checks.
    ref_mse = jnp.mean((x_mse - y_mse) ** 2)
    ref_l1 = jnp.mean(jnp.abs(x_l1 - y_l1))
    assert jnp.allclose(losses["mse"], ref_mse, rtol=1e-5, atol=1e-6)
    assert jnp.allclose(losses["l1"], ref_l1, rtol=1e-5, atol=1e-6)
    assert jnp.allclose(total, ref_mse + ref_l1, rtol=1e-5, atol=1e-6)

    # Exercise the multi-tile / dual-split / masked-partial-tile path (fused entry).
    ka, kb = jax.random.split(k1)
    xa = jax.random.normal(ka, (4, 4, 136, 136), jnp.float32)  # 2312 rows -> 2 tiles, partial tail
    ya = jax.random.normal(kb, (4, 4, 136, 136), jnp.float32)
    m2, l2 = mse_and_l1(xa, ya)
    assert jnp.allclose(m2, jnp.mean((xa - ya) ** 2), rtol=1e-4, atol=1e-5)
    assert jnp.allclose(l2, jnp.mean(jnp.abs(xa - ya)), rtol=1e-4, atol=1e-5)

    # Exercise the non-aligned (zero-pad fallback) path.
    xb = jax.random.normal(ka, (2, 3, 7, 5), jnp.float32)  # 210 elements
    yb = jax.random.normal(kb, (2, 3, 7, 5), jnp.float32)
    assert jnp.allclose(mse_loss(xb, yb), jnp.mean((xb - yb) ** 2),
                        rtol=1e-5, atol=1e-6)
    assert jnp.allclose(l1_loss(xb, yb), jnp.mean(jnp.abs(xb - yb)),
                        rtol=1e-5, atol=1e-6)

    jax.block_until_ready(m2)
    print("KERNEL_OK")
</pallas_src>

<mosaic_0001>
module attributes {stable_mosaic.version = 11 : i64} {
  func.func @kernel(%arg0: i32, %arg1: i32, %arg2: memref<16x128xf32, #tpu.memory_space<vmem>>, %arg3: memref<16x128xf32, #tpu.memory_space<vmem>>, %arg4: memref<8x128xf32, #tpu.memory_space<vmem>>) attributes {dimension_semantics = [#tpu.dimension_semantics<parallel>, #tpu.dimension_semantics<arbitrary>], iteration_bounds = array<i64: 1, 1>, scalar_prefetch = 0 : i64, scratch_operands = 0 : i64, tpu.core_type = #tpu.core_type<tc>, window_params = [{transform_indices = @transform_0, window_bounds = array<i64: 16, 128>}, {transform_indices = @transform_1, window_bounds = array<i64: 16, 128>}, {transform_indices = @transform_2, window_bounds = array<i64: 8, 128>}]} {
    %c0_i32 = arith.constant 0 : i32
    %0 = arith.cmpi eq, %arg1, %c0_i32 : i32
    %1 = arith.extui %0 : i1 to i32
    %c0_i32_0 = arith.constant 0 : i32
    %2 = arith.cmpi ne, %1, %c0_i32_0 : i32
    scf.if %2 {
      %cst_8 = arith.constant 0.000000e+00 : f32
      %12 = vector.broadcast %cst_8 : f32 to vector<8x128xf32>
      %c0_9 = arith.constant 0 : index
      %c0_10 = arith.constant 0 : index
      %13 = vector.load %arg4[%c0_9, %c0_10] : memref<8x128xf32, #tpu.memory_space<vmem>>, vector<8x128xf32>
      tpu.vector_store %arg4[%c0_9, %c0_10], %12 {strides = array<i32>} : memref<8x128xf32, #tpu.memory_space<vmem>>, vector<8x128xf32>,
    } else {
    }
    %c0 = arith.constant 0 : index
    %c0_1 = arith.constant 0 : index
    %3 = vector.load %arg2[%c0, %c0_1] : memref<16x128xf32, #tpu.memory_space<vmem>>, vector<16x128xf32>
    %c0_2 = arith.constant 0 : index
    %c0_3 = arith.constant 0 : index
    %4 = vector.load %arg3[%c0_2, %c0_3] : memref<16x128xf32, #tpu.memory_space<vmem>>, vector<16x128xf32>
    %5 = arith.subf %3, %4 : vector<16x128xf32>
    %6 = arith.mulf %5, %5 : vector<16x128xf32>
    %c0_4 = arith.constant 0 : index
    %c0_5 = arith.constant 0 : index
    %7 = vector.load %arg4[%c0_4, %c0_5] : memref<8x128xf32, #tpu.memory_space<vmem>>, vector<8x128xf32>
    %8 = vector.shape_cast %6 : vector<16x128xf32> to vector<2x8x128xf32>
    %cst = arith.constant dense<0.000000e+00> : vector<8x128xf32>
    %9 = vector.multi_reduction <add>, %8, %cst [0] : vector<2x8x128xf32> to vector<8x128xf32>
    %10 = arith.addf %7, %9 : vector<8x128xf32>
    %c0_6 = arith.constant 0 : index
    %c0_7 = arith.constant 0 : index
    %11 = vector.load %arg4[%c0_6, %c0_7] : memref<8x128xf32, #tpu.memory_space<vmem>>, vector<8x128xf32>
    tpu.vector_store %arg4[%c0_6, %c0_7], %10 {strides = array<i32>} : memref<8x128xf32, #tpu.memory_space<vmem>>, vector<8x128xf32>,
    return
  }
  func.func @transform_0(%arg0: i32, %arg1: i32) -> (i32, i32) {
    %c1_i32 = arith.constant 1 : i32
    %0 = arith.muli %arg0, %c1_i32 : i32
    %1 = arith.addi %0, %arg1 : i32
    %c0_i32 = arith.constant 0 : i32
    %2 = arith.minsi %1, %c0_i32 : i32
    %c0_i32_0 = arith.constant 0 : i32
    %c0_i32_1 = arith.constant 0 : i32
    return %2, %c0_i32_0 : i32, i32
  }
  func.func @transform_1(%arg0: i32, %arg1: i32) -> (i32, i32) {
    %c1_i32 = arith.constant 1 : i32
    %0 = arith.muli %arg0, %c1_i32 : i32
    %1 = arith.addi %0, %arg1 : i32
    %c0_i32 = arith.constant 0 : i32
    %2 = arith.minsi %1, %c0_i32 : i32
    %c0_i32_0 = arith.constant 0 : i32
    %c0_i32_1 = arith.constant 0 : i32
    return %2, %c0_i32_0 : i32, i32
  }
  func.func @transform_2(%arg0: i32, %arg1: i32) -> (i32, i32) {
    %c0_i32 = arith.constant 0 : i32
    %c0_i32_0 = arith.constant 0 : i32
    return %arg0, %c0_i32 : i32, i32
  }
}

</mosaic_0001>

<bundles_post_ra>
// kernel: tpu_custom_call.1
= control target key start
LH: loop header
LB: loop body
LE: loop exit
PB: predicated region body
PF: predicated region fallthrough
CT: control target
= control target key end

     0   :  { %7 = vsyncpa [#allocation3], 0  ;;  %s231_s0 = inlined_call_operand.hbm [shape: f32[16,128], index: 0, kind: input, shape index: {}]   ;;  %s232_s1 = inlined_call_operand.hbm [shape: f32[16,128], index: 1, kind: input, shape index: {}]   ;;  %s233_s2 = inlined_call_operand.hbm [shape: f32[8,128], index: 2, kind: output, shape index: {}]  }
   0x1   :  { %8 = vsyncpa [#allocation6], 0 }
   0x2   :  { %9 = vsyncpa [#allocation4], 0  ;;  %s175_s9 = smov [#allocation2]   ;;  %s103_s13 = scalar_lea.hbm %s231_s0, 256 }
   0x3   :  { %s21_s10 = sshll.u32 %s175_s9, 4  ;;  %p104_p0 = scmp.ne.s32.totalorder %s231_s0, %s103_s13  ;;  %s22_s10 = int_to_ptr.vmem [resolvable:$true] %s21_s10 }
   0x4   :  { %p107_p1 = scmp.lt.u32.totalorder %s103_s13, %s231_s0 }
   0x6   :  { %p109_p2 = pnand %p107_p1, %p104_p0 }
   0x8   :  { %112 = shalt.err (!%p109_p2)
}
   0x9   :  { %s113_s18 = scalar_lea.vmem %s22_s10, 256  ;;  %p118_p4 = scmp.lt.s32.totalorder %s22_s10, %s22_s10 }
   0xa   :  { %p114_p3 = scmp.ne.s32.totalorder %s22_s10, %s113_s18  ;;  %p119_p5 = scmp.lt.s32.totalorder %s113_s18, %s113_s18 }
   0xc   :  { %p120_p6 = por %p119_p5, %p118_p4 }
   0xe   :  { %p121_p7 = pnand %p120_p6, %p114_p3 }
  0x10   :  { %124 = shalt.err (!%p121_p7)
}
  0x11   :  { %s176_s19 = smov 128   ;;  %s177_s20 = smov 8  }
  0x12   :  { %27 = dma.hbm_to_vmem [thread:$0]  %s231_s0, 256, %s22_s10, [#allocation3], %s176_s19, %s176_s19, %s177_s20  }
  0x13   :  { %s178_s23 = smov [#allocation5]   ;;  %s125_s27 = scalar_lea.hbm %s232_s1, 256 }
  0x14   :  { %s39_s24 = sshll.u32 %s178_s23, 4  ;;  %p126_p8 = scmp.ne.s32.totalorder %s232_s1, %s125_s27  ;;  %s40_s24 = int_to_ptr.vmem [resolvable:$true] %s39_s24 }
  0x15   :  { %p129_p9 = scmp.lt.u32.totalorder %s125_s27, %s232_s1 }
  0x17   :  { %p131_p10 = pnand %p129_p9, %p126_p8 }
  0x19   :  { %134 = shalt.err (!%p131_p10)
}
  0x1a   :  { %s135_s4 = scalar_lea.vmem %s40_s24, 256  ;;  %p140_p12 = scmp.lt.s32.totalorder %s40_s24, %s40_s24 }
  0x1b   :  { %p136_p11 = scmp.ne.s32.totalorder %s40_s24, %s135_s4  ;;  %p141_p13 = scmp.lt.s32.totalorder %s135_s4, %s135_s4 }
  0x1d   :  { %p142_p0 = por %p141_p13, %p140_p12 }
  0x1f   :  { %p143_p1 = pnand %p142_p0, %p136_p11 }
  0x21   :  { %146 = shalt.err (!%p143_p1)
}
  0x22   :  { %45 = dma.hbm_to_vmem [thread:$0]  %s232_s1, 256, %s40_s24, [#allocation6], %s176_s19, %s176_s19, %s177_s20  }
  0x23   :  { %169 = dma.done.wait [#allocation3], 256  }
  0x24   :  { %170 = vsyncadd [#allocation3], 4294967040 }
  0x25   :  { %171 = dma.done.wait [#allocation6], 256  }
  0x26   :  { %172 = vsyncadd [#allocation6], 4294967040  ;;  %v65_v0 = vld [vmem:[#allocation2] sm:$0xff]  ;;  %v66_v1 = vld [vmem:[#allocation2 + $0x8] sm:$0xff]  ;;  %s179_s6 = smov [#allocation7]  }
  0x27   :  { %v67_v2 = vld [vmem:[#allocation5] sm:$0xff]  ;;  %v68_v3 = vld [vmem:[#allocation5 + $0x8] sm:$0xff]  ;;  %s83_s7 = sshll.u32 %s179_s6, 4  ;;  %s84_s7 = int_to_ptr.vmem [resolvable:$true] %s83_s7 }
  0x28   :  { %v69_v4 = vsub.f32 %v65_v0, %v67_v2  ;;  %v70_v5 = vsub.f32 %v66_v1, %v68_v3  ;;  %s147_s8 = scalar_lea.vmem %s84_s7, 128  ;;  %p152_p3 = scmp.lt.s32.totalorder %s84_s7, %s84_s7 }
  0x29   :  { %p148_p2 = scmp.ne.s32.totalorder %s84_s7, %s147_s8  ;;  %p153_p4 = scmp.lt.s32.totalorder %s147_s8, %s147_s8 }
  0x2a   :  { %v71_v6 = vmul.f32 %v69_v4, %v69_v4  ;;  %v72_v7 = vmul.f32 %v70_v5, %v70_v5 }
  0x2b   :  { %p154_p5 = por %p153_p4, %p152_p3 }
  0x2c   :  { %v74_v8 = vadd.f32 %v72_v7, %v71_v6 }
  0x2d   :  { %p155_p6 = pnand %p154_p5, %p148_p2 }
  0x2e   :  { %76 = vst [vmem:[#allocation7] sm:$0xff] %v74_v8 }
  0x2f   :  { %158 = shalt.err (!%p155_p6)
}
  0x30   :  { %s159_s10 = scalar_lea.hbm %s233_s2, 128 }
  0x31   :  { %p160_p7 = scmp.ne.s32.totalorder %s233_s2, %s159_s10  ;;  %p163_p8 = scmp.lt.u32.totalorder %s159_s10, %s233_s2 }
  0x33   :  { %p165_p9 = pnand %p163_p8, %p160_p7 }
  0x35   :  { %168 = shalt.err (!%p165_p9)
}
  0x36   :  { %86 = dma.vmem_to_hbm [thread:$0]  %s84_s7, 128, %s233_s2, [#allocation4]  }
  0x37   :  { %173 = dma.done.wait [#allocation4], 128  }
  0x38   :  { %174 = vsyncadd [#allocation4], 4294967168 }
  0x39   :  { %90 = vsyncpa [#allocation3], 1 }
  0x3a   :  { %91 = vsyncpa [#allocation6], 1 }
  0x3b   :  { %92 = vsyncpa [#allocation4], 1 }

</bundles_post_ra>
